<compile_context>
chip_gen: v6e
topology: v6e:2x2x1
jax: 0.10.0
libtpu: 0.0.40
codegen_flags: <defaults>
</compile_context>

<pallas_src>
import jax
import jax.numpy as jnp
from jax.experimental import pallas as pl
from jax.experimental.pallas import tpu as pltpu


def _se_kernel(x_ref, a_ref, w2t_ref, e_ref, o_ref):
    # x_ref/o_ref: (TB, CHW)  a_ref: (CHW, Cr)  w2t_ref: (Cr, C)  e_ref: (C, CHW)
    x = x_ref[...].astype(jnp.float32)                                    # (TB, CHW)

    # Fused global-avg-pool + fc1 (both linear): h = relu(mean_pool(x) @ W1^T)
    h = jnp.dot(x, a_ref[...], preferred_element_type=jnp.float32)        # (TB, Cr)
    h = jnp.maximum(h, 0.0)                                                # ReLU

    # fc2 + sigmoid on the small (TB, C) tensor (EUP only sees TB*C elements).
    y = jnp.dot(h, w2t_ref[...], preferred_element_type=jnp.float32)      # (TB, C)
    g = 1.0 / (1.0 + jnp.exp(-y))                                          # Sigmoid

    # Broadcast each channel gate over its HW lanes via an expansion matmul.
    s = jnp.dot(g, e_ref[...], preferred_element_type=jnp.float32)        # (TB, CHW)

    o_ref[...] = (x * s).astype(o_ref.dtype)                               # lane-dense store


def _tpu_budgets():
    """(target_tile_bytes, vmem_limit_bytes, min_grid_steps) per TPU generation."""
    vmem_cap = None
    try:
        vmem_cap = getattr(pltpu.get_tpu_info(), "vmem_capacity_bytes", None)
    except Exception:
        vmem_cap = None
    if vmem_cap is not None and vmem_cap > 96 * 1024 * 1024:
        # v5e / v6e: 128 MiB VMEM, single TensorCore -> biggest tiles, fewest steps.
        return 8 * 1024 * 1024, 64 * 1024 * 1024, 1
    # v7x (64 MiB VMEM, 2 TensorCores) or unknown: conservative tiles and >= 4
    # even grid steps so the "parallel" batch axis keeps both cores busy.
    return 3 * 1024 * 1024, 32 * 1024 * 1024, 4


def _choose_batch_tile(B, chw, itemsize, target_bytes, min_steps):
    """Pick (tb, padded_B).

    tb (batch rows per grid step) is a multiple of 8 so blocks fill sublanes
    and satisfy the (8,128) rule, unless the whole batch fits in one block
    (block_shape == full array dims is always legal).  padded_B is a multiple
    of tb so there is no ragged trailing block.
    """
    per_image = max(chw * itemsize, 1)
    tb = max(1, target_bytes // per_image)                     # byte budget per tile
    if min_steps > 1:
        tb = min(tb, max(1, (B + min_steps - 1) // min_steps))  # leave work for all cores
    if tb >= B:
        return B, B                                             # single full-dim block
    tb = max(8, tb - (tb % 8))                                  # sublane-filling tile
    bp = ((B + tb - 1) // tb) * tb
    return tb, bp


def se_layer(x, w1, w2):
    """SELayer forward. x: (B, C, H, W); w1: (C//r, C); w2: (C, C//r) (PyTorch Linear layouts)."""
    B, C, H, W = x.shape
    Cr = w1.shape[0]
    HW = H * W
    CHW = C * HW
    f32 = jnp.float32

    # A[c*HW + j, r] = w1[r, c] / HW  -> fuses avg-pool with fc1 (both linear).
    A = jnp.repeat(w1.astype(f32).T / HW, HW, axis=0)                     # (CHW, Cr)
    W2T = w2.astype(f32).T                                                # (Cr, C)
    # E[c', c*HW + j] = 1 iff c' == c  -> per-channel broadcast over HW.
    E = jnp.repeat(jnp.eye(C, dtype=f32), HW, axis=1)                     # (C, CHW)

    target_bytes, vmem_limit, min_steps = _tpu_budgets()
    itemsize = x.dtype.itemsize
    tb, bp = _choose_batch_tile(B, CHW, itemsize, target_bytes, min_steps)

    xr = x.reshape(B, CHW)                                                # lane-dense 2-D layout
    if bp > B:
        xr = jnp.pad(xr, ((0, bp - B), (0, 0)))                           # zero rows -> zero out
    grid = (bp // tb,)

    cost = pl.CostEstimate(
        flops=2 * bp * (CHW * Cr + Cr * C + C * CHW) + 2 * bp * CHW,
        transcendentals=bp * C,
        bytes_accessed=2 * bp * CHW * itemsize + 4 * (A.size + W2T.size + E.size),
    )

    out = pl.pallas_call(
        _se_kernel,
        out_shape=jax.ShapeDtypeStruct((bp, CHW), x.dtype),
        grid_spec=pltpu.PrefetchScalarGridSpec(
            num_scalar_prefetch=0,
            grid=grid,
            in_specs=[
                pl.BlockSpec((tb, CHW), lambda i: (i, 0)),
                pl.BlockSpec((CHW, Cr), lambda i: (0, 0)),   # constant index map -> DMA'd once
                pl.BlockSpec((Cr, C), lambda i: (0, 0)),
                pl.BlockSpec((C, CHW), lambda i: (0, 0)),
            ],
            out_specs=pl.BlockSpec((tb, CHW), lambda i: (i, 0)),
        ),
        compiler_params=pltpu.CompilerParams(
            dimension_semantics=("parallel",),
            vmem_limit_bytes=vmem_limit,
        ),
        cost_estimate=cost,
        # input_output_aliases={0: 0} would save the second HBM buffer (footprint
        # only, not bandwidth); left off so callers can keep x alive after the call.
    )(xr, A, W2T, E)
    return out[:B].reshape(B, C, H, W)


def se_reference(x, w1, w2):
    y = jnp.mean(x, axis=(2, 3))                                          # (B, C)
    y = jnp.maximum(y @ w1.T, 0.0)                                        # (B, C//r)
    y = 1.0 / (1.0 + jnp.exp(-(y @ w2.T)))                                # (B, C)
    return x * y[:, :, None, None]


if __name__ == "__main__":
    # Small shapes consistent with the module: channel=32, reduction=16 -> hidden=2
    B, C, H, W = 2, 32, 8, 8
    reduction = 16
    Cr = C // reduction

    key = jax.random.PRNGKey(0)
    kx, k1, k2 = jax.random.split(key, 3)
    x = jax.random.normal(kx, (B, C, H, W), dtype=jnp.float32)
    # Deterministic synthetic weights (PyTorch Linear weight shapes: (out, in))
    w1 = jax.random.uniform(k1, (Cr, C), dtype=jnp.float32, minval=-0.2, maxval=0.2)
    w2 = jax.random.uniform(k2, (C, Cr), dtype=jnp.float32, minval=-0.2, maxval=0.2)

    out = jax.block_until_ready(se_layer(x, w1, w2))
    ref = se_reference(x, w1, w2)

    assert out.shape == (B, C, H, W)
    assert jnp.allclose(out, ref, atol=1e-4, rtol=1e-4), "mismatch vs reference"

    print("KERNEL_OK")
</pallas_src>

<mosaic_0001>
module attributes {stable_mosaic.version = 11 : i64} {
  func.func @_se_kernel(%arg0: i32, %arg1: memref<8x2048xf32, #tpu.memory_space<vmem>>, %arg2: memref<2048x2xf32, #tpu.memory_space<vmem>>, %arg3: memref<2x32xf32, #tpu.memory_space<vmem>>, %arg4: memref<32x2048xf32, #tpu.memory_space<vmem>>, %arg5: memref<8x2048xf32, #tpu.memory_space<vmem>>) attributes {dimension_semantics = [#tpu.dimension_semantics<parallel>], iteration_bounds = array<i64: 1>, scalar_prefetch = 0 : i64, scratch_operands = 0 : i64, tpu.core_type = #tpu.core_type<tc>, window_params = [{transform_indices = @transform_0, window_bounds = array<i64: 8, 2048>}, {pipeline_mode = #tpu.pipeline_mode<synchronous>, transform_indices = @transform_1, window_bounds = array<i64: 2048, 2>}, {pipeline_mode = #tpu.pipeline_mode<synchronous>, transform_indices = @transform_2, window_bounds = array<i64: 2, 32>}, {pipeline_mode = #tpu.pipeline_mode<synchronous>, transform_indices = @transform_3, window_bounds = array<i64: 32, 2048>}, {transform_indices = @transform_4, window_bounds = array<i64: 8, 2048>}]} {
    %c0 = arith.constant 0 : index
    %c0_0 = arith.constant 0 : index
    %0 = vector.load %arg1[%c0, %c0_0] : memref<8x2048xf32, #tpu.memory_space<vmem>>, vector<8x2048xf32>
    %c0_1 = arith.constant 0 : index
    %c0_2 = arith.constant 0 : index
    %1 = vector.load %arg2[%c0_1, %c0_2] : memref<2048x2xf32, #tpu.memory_space<vmem>>, vector<2048x2xf32>
    %cst = arith.constant dense<0.000000e+00> : vector<8x2xf32>
    %2 = tpu.matmul %0, %1, %cst {dimension_numbers = #tpu.dot_dimension_numbers<[1], [0], [0], [1], [0, 0, 1, 1], [], []>} : vector<8x2048xf32>, vector<2048x2xf32>, vector<8x2xf32> -> vector<8x2xf32>
    %cst_3 = arith.constant 0.000000e+00 : f32
    %3 = vector.broadcast %cst_3 : f32 to vector<8x2xf32>
    %4 = arith.maximumf %2, %3 : vector<8x2xf32>
    %c0_4 = arith.constant 0 : index
    %c0_5 = arith.constant 0 : index
    %5 = vector.load %arg3[%c0_4, %c0_5] : memref<2x32xf32, #tpu.memory_space<vmem>>, vector<2x32xf32>
    %cst_6 = arith.constant dense<0.000000e+00> : vector<8x32xf32>
    %6 = tpu.matmul %4, %5, %cst_6 {dimension_numbers = #tpu.dot_dimension_numbers<[1], [0], [0], [1], [0, 0, 1, 1], [], []>} : vector<8x2xf32>, vector<2x32xf32>, vector<8x32xf32> -> vector<8x32xf32>
    %cst_7 = arith.constant 0.000000e+00 : f32
    %7 = vector.broadcast %cst_7 : f32 to vector<8x32xf32>
    %8 = arith.subf %7, %6 : vector<8x32xf32>
    %9 = math.exp %8 : vector<8x32xf32>
    %cst_8 = arith.constant 1.000000e+00 : f32
    %10 = vector.broadcast %cst_8 : f32 to vector<8x32xf32>
    %11 = arith.addf %10, %9 : vector<8x32xf32>
    %cst_9 = arith.constant 1.000000e+00 : f32
    %12 = vector.broadcast %cst_9 : f32 to vector<8x32xf32>
    %13 = arith.divf %12, %11 : vector<8x32xf32>
    %c0_10 = arith.constant 0 : index
    %c0_11 = arith.constant 0 : index
    %14 = vector.load %arg4[%c0_10, %c0_11] : memref<32x2048xf32, #tpu.memory_space<vmem>>, vector<32x2048xf32>
    %cst_12 = arith.constant dense<0.000000e+00> : vector<8x2048xf32>
    %15 = tpu.matmul %13, %14, %cst_12 {dimension_numbers = #tpu.dot_dimension_numbers<[1], [0], [0], [1], [0, 0, 1, 1], [], []>} : vector<8x32xf32>, vector<32x2048xf32>, vector<8x2048xf32> -> vector<8x2048xf32>
    %16 = arith.mulf %0, %15 : vector<8x2048xf32>
    %c0_13 = arith.constant 0 : index
    %c0_14 = arith.constant 0 : index
    %17 = vector.load %arg5[%c0_13, %c0_14] : memref<8x2048xf32, #tpu.memory_space<vmem>>, vector<8x2048xf32>
    tpu.vector_store %arg5[%c0_13, %c0_14], %16 {strides = array<i32>} : memref<8x2048xf32, #tpu.memory_space<vmem>>, vector<8x2048xf32>,
    return
  }
  func.func @transform_0(%arg0: i32) -> (i32, i32) {
    %c0_i32 = arith.constant 0 : i32
    %c0_i32_0 = arith.constant 0 : i32
    return %arg0, %c0_i32 : i32, i32
  }
  func.func @transform_1(%arg0: i32) -> (i32, i32) {
    %c0_i32 = arith.constant 0 : i32
    %c0_i32_0 = arith.constant 0 : i32
    %c0_i32_1 = arith.constant 0 : i32
    return %c0_i32, %c0_i32_0 : i32, i32
  }
  func.func @transform_2(%arg0: i32) -> (i32, i32) {
    %c0_i32 = arith.constant 0 : i32
    %c0_i32_0 = arith.constant 0 : i32
    %c0_i32_1 = arith.constant 0 : i32
    return %c0_i32, %c0_i32_0 : i32, i32
  }
  func.func @transform_3(%arg0: i32) -> (i32, i32) {
    %c0_i32 = arith.constant 0 : i32
    %c0_i32_0 = arith.constant 0 : i32
    %c0_i32_1 = arith.constant 0 : i32
    return %c0_i32, %c0_i32_0 : i32, i32
  }
  func.func @transform_4(%arg0: i32) -> (i32, i32) {
    %c0_i32 = arith.constant 0 : i32
    %c0_i32_0 = arith.constant 0 : i32
    return %arg0, %c0_i32 : i32, i32
  }
}

</mosaic_0001>

<bundles_post_ra>
// kernel: tpu_custom_call.1
= control target key start
LH: loop header
LB: loop body
LE: loop exit
PB: predicated region body
PF: predicated region fallthrough
CT: control target
= control target key end

     0   :  { %s3078_s0 = inlined_call_operand.vmem [shape: f32[8,2048], index: 0, kind: input, shape index: {}]   ;;  %s3079_s1 = inlined_call_operand.vmem [shape: f32[2048,2], index: 1, kind: input, shape index: {}]   ;;  %s3080_s2 = inlined_call_operand.vmem [shape: f32[2,32], index: 2, kind: input, shape index: {}]   ;;  %s3081_s3 = inlined_call_operand.vmem [shape: f32[32,2048], index: 3, kind: input, shape index: {}]   ;;  %s3082_s4 = inlined_call_operand.hbm [shape: f32[8,2048], index: 4, kind: output, shape index: {}]  }
   0x1   :  { %v65_v0 = vld [vmem:[%s3079_s1 + $0xf8] sm:$0xff]  ;;  %v64_v4 = vld [vmem:[%s3079_s1 + $0xf0] sm:$0xff]  ;;  %v63_v8 = vld [vmem:[%s3079_s1 + $0xe8] sm:$0xff] }
   0x2   :  { %v97_v1 = vld [vmem:[%s3079_s1 + $0x1f8] sm:$0xff]  ;;  %1628 = vmatprep.subr.mxu0 %v65_v0  ;;  %v96_v5 = vld [vmem:[%s3079_s1 + $0x1f0] sm:$0xff]  ;;  %v95_v9 = vld [vmem:[%s3079_s1 + $0x1e8] sm:$0xff] }
   0x3   :  { %v49_v2 = vld [vmem:[%s3079_s1 + $0x78] sm:$0xff]  ;;  %1663 = vmatprep.subr.mxu1 %v97_v1  ;;  %v48_v6 = vld [vmem:[%s3079_s1 + $0x70] sm:$0xff]  ;;  %v47_v10 = vld [vmem:[%s3079_s1 + $0x68] sm:$0xff] }
   0x4   :  { %v81_v3 = vld [vmem:[%s3079_s1 + $0x178] sm:$0xff]  ;;  %1629 = vmatpush3.msra.mxu0 %v49_v2  ;;  %v80_v7 = vld [vmem:[%s3079_s1 + $0x170] sm:$0xff]  ;;  %v79_v11 = vld [vmem:[%s3079_s1 + $0x168] sm:$0xff] }
   0x5   :  { %1664 = vmatpush3.msra.mxu1 %v81_v3  ;;  %1630 = vmatprep.subr.mxu0 %v64_v4  ;;  %v62_v12 = vld [vmem:[%s3079_s1 + $0xe0] sm:$0xff]  ;;  %v61_v16 = vld [vmem:[%s3079_s1 + $0xd8] sm:$0xff]  ;;  %v60_v20 = vld [vmem:[%s3079_s1 + $0xd0] sm:$0xff] }
   0x6   :  { %1665 = vmatprep.subr.mxu1 %v96_v5  ;;  %1631 = vmatpush3.msra.mxu0 %v48_v6  ;;  %v94_v13 = vld [vmem:[%s3079_s1 + $0x1e0] sm:$0xff]  ;;  %v93_v17 = vld [vmem:[%s3079_s1 + $0x1d8] sm:$0xff]  ;;  %v92_v21 = vld [vmem:[%s3079_s1 + $0x1d0] sm:$0xff] }
   0x7   :  { %1666 = vmatpush3.msra.mxu1 %v80_v7  ;;  %1632 = vmatprep.subr.mxu0 %v63_v8  ;;  %v46_v14 = vld [vmem:[%s3079_s1 + $0x60] sm:$0xff]  ;;  %v45_v18 = vld [vmem:[%s3079_s1 + $0x58] sm:$0xff]  ;;  %v44_v22 = vld [vmem:[%s3079_s1 + $0x50] sm:$0xff] }
   0x8   :  { %1667 = vmatprep.subr.mxu1 %v95_v9  ;;  %v78_v15 = vld [vmem:[%s3079_s1 + $0x160] sm:$0xff]  ;;  %1633 = vmatpush3.msra.mxu0 %v47_v10  ;;  %v77_v19 = vld [vmem:[%s3079_s1 + $0x158] sm:$0xff]  ;;  %v76_v23 = vld [vmem:[%s3079_s1 + $0x150] sm:$0xff] }
   0x9   :  { %1668 = vmatpush3.msra.mxu1 %v79_v11  ;;  %1634 = vmatprep.subr.mxu0 %v62_v12  ;;  %v59_v24 = vld [vmem:[%s3079_s1 + $0xc8] sm:$0xff]  ;;  %v58_v28 = vld [vmem:[%s3079_s1 + $0xc0] sm:$0xff]  ;;  %v57_v32 = vld [vmem:[%s3079_s1 + $0xb8] sm:$0xff] }
   0xa   :  { %1669 = vmatprep.subr.mxu1 %v94_v13  ;;  %1635 = vmatpush3.msra.mxu0 %v46_v14  ;;  %v91_v25 = vld [vmem:[%s3079_s1 + $0x1c8] sm:$0xff]  ;;  %v90_v29 = vld [vmem:[%s3079_s1 + $0x1c0] sm:$0xff]  ;;  %v89_v33 = vld [vmem:[%s3079_s1 + $0x1b8] sm:$0xff] }
   0xb   :  { %1670 = vmatpush3.msra.mxu1 %v78_v15  ;;  %1636 = vmatprep.subr.mxu0 %v61_v16  ;;  %v43_v26 = vld [vmem:[%s3079_s1 + $0x48] sm:$0xff]  ;;  %v42_v30 = vld [vmem:[%s3079_s1 + $0x40] sm:$0xff]  ;;  %v41_v34 = vld [vmem:[%s3079_s1 + $0x38] sm:$0xff] }
   0xc   :  { %1671 = vmatprep.subr.mxu1 %v93_v17  ;;  %1637 = vmatpush3.msra.mxu0 %v45_v18  ;;  %v75_v27 = vld [vmem:[%s3079_s1 + $0x148] sm:$0xff]  ;;  %v74_v31 = vld [vmem:[%s3079_s1 + $0x140] sm:$0xff]  ;;  %v73_v35 = vld [vmem:[%s3079_s1 + $0x138] sm:$0xff] }
   0xd   :  { %1672 = vmatpush3.msra.mxu1 %v77_v19  ;;  %1638 = vmatprep.subr.mxu0 %v60_v20  ;;  %v56_v36 = vld [vmem:[%s3079_s1 + $0xb0] sm:$0xff]  ;;  %v55_v40 = vld [vmem:[%s3079_s1 + $0xa8] sm:$0xff]  ;;  %v54_v44 = vld [vmem:[%s3079_s1 + $0xa0] sm:$0xff] }
   0xe   :  { %1673 = vmatprep.subr.mxu1 %v92_v21  ;;  %1639 = vmatpush3.msra.mxu0 %v44_v22  ;;  %v88_v37 = vld [vmem:[%s3079_s1 + $0x1b0] sm:$0xff]  ;;  %v87_v41 = vld [vmem:[%s3079_s1 + $0x1a8] sm:$0xff]  ;;  %v86_v45 = vld [vmem:[%s3079_s1 + $0x1a0] sm:$0xff] }
   0xf   :  { %1674 = vmatpush3.msra.mxu1 %v76_v23  ;;  %1640 = vmatprep.subr.mxu0 %v59_v24  ;;  %v40_v38 = vld [vmem:[%s3079_s1 + $0x30] sm:$0xff]  ;;  %v39_v42 = vld [vmem:[%s3079_s1 + $0x28] sm:$0xff]  ;;  %v38_v46 = vld [vmem:[%s3079_s1 + $0x20] sm:$0xff] }
  0x10   :  { %1675 = vmatprep.subr.mxu1 %v91_v25  ;;  %1641 = vmatpush3.msra.mxu0 %v43_v26  ;;  %v72_v39 = vld [vmem:[%s3079_s1 + $0x130] sm:$0xff]  ;;  %v71_v43 = vld [vmem:[%s3079_s1 + $0x128] sm:$0xff]  ;;  %v70_v47 = vld [vmem:[%s3079_s1 + $0x120] sm:$0xff] }
  0x11   :  { %1676 = vmatpush3.msra.mxu1 %v75_v27  ;;  %1642 = vmatprep.subr.mxu0 %v58_v28  ;;  %v53_v48 = vld [vmem:[%s3079_s1 + $0x98] sm:$0xff]  ;;  %v52_v52 = vld [vmem:[%s3079_s1 + $0x90] sm:$0xff]  ;;  %v51_v56 = vld [vmem:[%s3079_s1 + $0x88] sm:$0xff] }
  0x12   :  { %1677 = vmatprep.subr.mxu1 %v90_v29  ;;  %1643 = vmatpush3.msra.mxu0 %v42_v30  ;;  %v85_v49 = vld [vmem:[%s3079_s1 + $0x198] sm:$0xff]  ;;  %v84_v53 = vld [vmem:[%s3079_s1 + $0x190] sm:$0xff]  ;;  %v83_v57 = vld [vmem:[%s3079_s1 + $0x188] sm:$0xff] }
  0x13   :  { %1678 = vmatpush3.msra.mxu1 %v74_v31  ;;  %1644 = vmatprep.subr.mxu0 %v57_v32  ;;  %v37_v50 = vld [vmem:[%s3079_s1 + $0x18] sm:$0xff]  ;;  %v36_v54 = vld [vmem:[%s3079_s1 + $0x10] sm:$0xff]  ;;  %v35_v58 = vld [vmem:[%s3079_s1 + $0x8] sm:$0xff] }
  0x14   :  { %1679 = vmatprep.subr.mxu1 %v89_v33  ;;  %1645 = vmatpush3.msra.mxu0 %v41_v34  ;;  %v69_v51 = vld [vmem:[%s3079_s1 + $0x118] sm:$0xff]  ;;  %v68_v55 = vld [vmem:[%s3079_s1 + $0x110] sm:$0xff]  ;;  %v67_v59 = vld [vmem:[%s3079_s1 + $0x108] sm:$0xff] }
  0x15   :  { %1680 = vmatpush3.msra.mxu1 %v73_v35  ;;  %1646 = vmatprep.subr.mxu0 %v56_v36  ;;  %v50_v60 = vld [vmem:[%s3079_s1 + $0x80] sm:$0xff]  ;;  %v19_v63 = vld [vmem:[%s3078_s0 + $0x8] sm:$0xff]  ;;  %v21_v1 = vld [vmem:[%s3078_s0 + $0x18] sm:$0xff] }
  0x16   :  { %1681 = vmatprep.subr.mxu1 %v88_v37  ;;  %1647 = vmatpush3.msra.mxu0 %v40_v38  ;;  %v82_v61 = vld [vmem:[%s3079_s1 + $0x180] sm:$0xff]  ;;  %v20_v3 = vld [vmem:[%s3078_s0 + $0x10] sm:$0xff]  ;;  %v129_v4 = vld [vmem:[%s3079_s1 + $0x2f8] sm:$0xff] }
  0x17   :  { %1682 = vmatpush3.msra.mxu1 %v72_v39  ;;  %1648 = vmatprep.subr.mxu0 %v55_v40  ;;  %v34_v62 = vld [vmem:[%s3079_s1] sm:$0xff]  ;;  %v161_v5 = vld [vmem:[%s3079_s1 + $0x3f8] sm:$0xff]  ;;  %v128_v8 = vld [vmem:[%s3079_s1 + $0x2f0] sm:$0xff] }
  0x18   :  { %1683 = vmatprep.subr.mxu1 %v87_v41  ;;  %1649 = vmatpush3.msra.mxu0 %v39_v42  ;;  %v66_v0 = vld [vmem:[%s3079_s1 + $0x100] sm:$0xff]  ;;  %v113_v6 = vld [vmem:[%s3079_s1 + $0x278] sm:$0xff]  ;;  %v160_v9 = vld [vmem:[%s3079_s1 + $0x3f0] sm:$0xff] }
  0x19   :  { %1684 = vmatpush3.msra.mxu1 %v71_v43  ;;  %1650 = vmatprep.subr.mxu0 %v54_v44  ;;  %v18_v2 = vld [vmem:[%s3078_s0] sm:$0xff]  ;;  %v145_v7 = vld [vmem:[%s3079_s1 + $0x378] sm:$0xff]  ;;  %v112_v10 = vld [vmem:[%s3079_s1 + $0x270] sm:$0xff] }
  0x1a   :  { %1685 = vmatprep.subr.mxu1 %v86_v45  ;;  %1651 = vmatpush3.msra.mxu0 %v38_v46  ;;  %v144_v11 = vld [vmem:[%s3079_s1 + $0x370] sm:$0xff]  ;;  %v127_v12 = vld [vmem:[%s3079_s1 + $0x2e8] sm:$0xff]  ;;  %v126_v16 = vld [vmem:[%s3079_s1 + $0x2e0] sm:$0xff] }
  0x1b   :  { %1686 = vmatpush3.msra.mxu1 %v70_v47  ;;  %1652 = vmatprep.subr.mxu0 %v53_v48  ;;  %v159_v13 = vld [vmem:[%s3079_s1 + $0x3e8] sm:$0xff]  ;;  %v158_v17 = vld [vmem:[%s3079_s1 + $0x3e0] sm:$0xff]  ;;  %v125_v20 = vld [vmem:[%s3079_s1 + $0x2d8] sm:$0xff] }
  0x1c   :  { %1687 = vmatprep.subr.mxu1 %v85_v49  ;;  %1653 = vmatpush3.msra.mxu0 %v37_v50  ;;  %v111_v14 = vld [vmem:[%s3079_s1 + $0x268] sm:$0xff]  ;;  %v110_v18 = vld [vmem:[%s3079_s1 + $0x260] sm:$0xff]  ;;  %v157_v21 = vld [vmem:[%s3079_s1 + $0x3d8] sm:$0xff] }
  0x1d   :  { %1688 = vmatpush3.msra.mxu1 %v69_v51  ;;  %1654 = vmatprep.subr.mxu0 %v52_v52  ;;  %v143_v15 = vld [vmem:[%s3079_s1 + $0x368] sm:$0xff]  ;;  %v142_v19 = vld [vmem:[%s3079_s1 + $0x360] sm:$0xff]  ;;  %v109_v22 = vld [vmem:[%s3079_s1 + $0x258] sm:$0xff] }
  0x1e   :  { %1689 = vmatprep.subr.mxu1 %v84_v53  ;;  %1655 = vmatpush3.msra.mxu0 %v36_v54  ;;  %v141_v23 = vld [vmem:[%s3079_s1 + $0x358] sm:$0xff]  ;;  %v124_v24 = vld [vmem:[%s3079_s1 + $0x2d0] sm:$0xff]  ;;  %v123_v28 = vld [vmem:[%s3079_s1 + $0x2c8] sm:$0xff] }
  0x1f   :  { %1690 = vmatpush3.msra.mxu1 %v68_v55  ;;  %1656 = vmatprep.subr.mxu0 %v51_v56  ;;  %v156_v25 = vld [vmem:[%s3079_s1 + $0x3d0] sm:$0xff]  ;;  %v155_v29 = vld [vmem:[%s3079_s1 + $0x3c8] sm:$0xff]  ;;  %v122_v32 = vld [vmem:[%s3079_s1 + $0x2c0] sm:$0xff] }
  0x20   :  { %1691 = vmatprep.subr.mxu1 %v83_v57  ;;  %1657 = vmatpush3.msra.mxu0 %v35_v58  ;;  %v108_v26 = vld [vmem:[%s3079_s1 + $0x250] sm:$0xff]  ;;  %v107_v30 = vld [vmem:[%s3079_s1 + $0x248] sm:$0xff]  ;;  %v154_v33 = vld [vmem:[%s3079_s1 + $0x3c0] sm:$0xff] }
  0x21   :  { %1692 = vmatpush3.msra.mxu1 %v67_v59  ;;  %1658 = vmatprep.subr.mxu0 %v50_v60  ;;  %v140_v27 = vld [vmem:[%s3079_s1 + $0x350] sm:$0xff]  ;;  %v139_v31 = vld [vmem:[%s3079_s1 + $0x348] sm:$0xff]  ;;  %v106_v34 = vld [vmem:[%s3079_s1 + $0x240] sm:$0xff] }
  0x22   :  { %1693 = vmatprep.subr.mxu1 %v82_v61  ;;  %1659 = vmatpush3.msra.mxu0 %v34_v62  ;;  %v138_v35 = vld [vmem:[%s3079_s1 + $0x340] sm:$0xff]  ;;  %v121_v36 = vld [vmem:[%s3079_s1 + $0x2b8] sm:$0xff]  ;;  %v120_v40 = vld [vmem:[%s3079_s1 + $0x2b0] sm:$0xff] }
  0x23   :  { %354 = vmatprep.mubr.f32.mxu0 %v19_v63  ;;  %1694 = vmatpush3.msra.mxu1 %v66_v0  ;;  %v153_v37 = vld [vmem:[%s3079_s1 + $0x3b8] sm:$0xff]  ;;  %v152_v41 = vld [vmem:[%s3079_s1 + $0x3b0] sm:$0xff]  ;;  %v119_v44 = vld [vmem:[%s3079_s1 + $0x2a8] sm:$0xff] }
  0x24   :  { %424 = vmatprep.mubr.f32.mxu1 %v21_v1  ;;  %355 = vmatmul.mubr.f32.vlgmr.msra.gmra.mxu0 %v18_v2  ;;  %v105_v38 = vld [vmem:[%s3079_s1 + $0x238] sm:$0xff]  ;;  %v104_v42 = vld [vmem:[%s3079_s1 + $0x230] sm:$0xff]  ;;  %v151_v45 = vld [vmem:[%s3079_s1 + $0x3a8] sm:$0xff] }
  0x25   :  { %425 = vmatmul.mubr.f32.vlgmr.msra.gmra.mxu1 %v20_v3  ;;  %1698 = vmatprep.subr.mxu0 %v129_v4  ;;  %v137_v39 = vld [vmem:[%s3079_s1 + $0x338] sm:$0xff]  ;;  %v136_v43 = vld [vmem:[%s3079_s1 + $0x330] sm:$0xff]  ;;  %v103_v46 = vld [vmem:[%s3079_s1 + $0x228] sm:$0xff] }
  0x26   :  { %1733 = vmatprep.subr.mxu1 %v161_v5  ;;  %1699 = vmatpush3.msra.mxu0 %v113_v6  ;;  %v135_v47 = vld [vmem:[%s3079_s1 + $0x328] sm:$0xff]  ;;  %v118_v48 = vld [vmem:[%s3079_s1 + $0x2a0] sm:$0xff]  ;;  %v117_v52 = vld [vmem:[%s3079_s1 + $0x298] sm:$0xff] }
  0x27   :  { %1734 = vmatpush3.msra.mxu1 %v145_v7  ;;  %1700 = vmatprep.subr.mxu0 %v128_v8  ;;  %v150_v49 = vld [vmem:[%s3079_s1 + $0x3a0] sm:$0xff]  ;;  %v149_v53 = vld [vmem:[%s3079_s1 + $0x398] sm:$0xff]  ;;  %v116_v56 = vld [vmem:[%s3079_s1 + $0x290] sm:$0xff] }
  0x28   :  { %1735 = vmatprep.subr.mxu1 %v160_v9  ;;  %1701 = vmatpush3.msra.mxu0 %v112_v10  ;;  %v102_v50 = vld [vmem:[%s3079_s1 + $0x220] sm:$0xff]  ;;  %v101_v54 = vld [vmem:[%s3079_s1 + $0x218] sm:$0xff]  ;;  %v148_v57 = vld [vmem:[%s3079_s1 + $0x390] sm:$0xff] }
  0x29   :  { %1736 = vmatpush3.msra.mxu1 %v144_v11  ;;  %1702 = vmatprep.subr.mxu0 %v127_v12  ;;  %v134_v51 = vld [vmem:[%s3079_s1 + $0x320] sm:$0xff]  ;;  %v133_v55 = vld [vmem:[%s3079_s1 + $0x318] sm:$0xff]  ;;  %v100_v58 = vld [vmem:[%s3079_s1 + $0x210] sm:$0xff] }
  0x2a   :  { %1737 = vmatprep.subr.mxu1 %v159_v13  ;;  %1703 = vmatpush3.msra.mxu0 %v111_v14  ;;  %v132_v59 = vld [vmem:[%s3079_s1 + $0x310] sm:$0xff]  ;;  %v115_v60 = vld [vmem:[%s3079_s1 + $0x288] sm:$0xff]  ;;  %v114_v0 = vld [vmem:[%s3079_s1 + $0x280] sm:$0xff] }
  0x2b   :  { %1738 = vmatpush3.msra.mxu1 %v143_v15  ;;  %1704 = vmatprep.subr.mxu0 %v126_v16  ;;  %v147_v61 = vld [vmem:[%s3079_s1 + $0x388] sm:$0xff]  ;;  %v146_v1 = vld [vmem:[%s3079_s1 + $0x380] sm:$0xff]  ;;  %v2385_v6 = vld [vmem:[%s3078_s0 + $0x38] sm:$0xff] }
  0x2c   :  { %1739 = vmatprep.subr.mxu1 %v158_v17  ;;  %1705 = vmatpush3.msra.mxu0 %v110_v18  ;;  %v99_v62 = vld [vmem:[%s3079_s1 + $0x208] sm:$0xff]  ;;  %v98_v2 = vld [vmem:[%s3079_s1 + $0x200] sm:$0xff]  ;;  %v193_v7 = vld [vmem:[%s3079_s1 + $0x4f8] sm:$0xff] }
  0x2d   :  { %1740 = vmatpush3.msra.mxu1 %v142_v19  ;;  %1706 = vmatprep.subr.mxu0 %v125_v20  ;;  %v131_v63 = vld [vmem:[%s3079_s1 + $0x308] sm:$0xff]  ;;  %v130_v4 = vld [vmem:[%s3079_s1 + $0x300] sm:$0xff]  ;;  %v225_v8 = vld [vmem:[%s3079_s1 + $0x5f8] sm:$0xff] }
  0x2e   :  { %1741 = vmatprep.subr.mxu1 %v157_v21  ;;  %1707 = vmatpush3.msra.mxu0 %v109_v22  ;;  %v2372_v3 = vld [vmem:[%s3078_s0 + $0x28] sm:$0xff]  ;;  %v2380_v5 = vld [vmem:[%s3078_s0 + $0x20] sm:$0xff]  ;;  %v2397_v9 = vld [vmem:[%s3078_s0 + $0x30] sm:$0xff] }
  0x2f   :  { %1742 = vmatpush3.msra.mxu1 %v141_v23  ;;  %1708 = vmatprep.subr.mxu0 %v124_v24  ;;  %v177_v10 = vld [vmem:[%s3079_s1 + $0x478] sm:$0xff]  ;;  %v192_v12 = vld [vmem:[%s3079_s1 + $0x4f0] sm:$0xff]  ;;  %v191_v16 = vld [vmem:[%s3079_s1 + $0x4e8] sm:$0xff] }
  0x30   :  { %1743 = vmatprep.subr.mxu1 %v156_v25  ;;  %1709 = vmatpush3.msra.mxu0 %v108_v26  ;;  %v209_v11 = vld [vmem:[%s3079_s1 + $0x578] sm:$0xff]  ;;  %v224_v13 = vld [vmem:[%s3079_s1 + $0x5f0] sm:$0xff]  ;;  %v223_v17 = vld [vmem:[%s3079_s1 + $0x5e8] sm:$0xff] }
  0x31   :  { %1744 = vmatpush3.msra.mxu1 %v140_v27  ;;  %1710 = vmatprep.subr.mxu0 %v123_v28  ;;  %v176_v14 = vld [vmem:[%s3079_s1 + $0x470] sm:$0xff]  ;;  %v175_v18 = vld [vmem:[%s3079_s1 + $0x468] sm:$0xff]  ;;  %v190_v20 = vld [vmem:[%s3079_s1 + $0x4e0] sm:$0xff] }
  0x32   :  { %1745 = vmatprep.subr.mxu1 %v155_v29  ;;  %1711 = vmatpush3.msra.mxu0 %v107_v30  ;;  %v208_v15 = vld [vmem:[%s3079_s1 + $0x570] sm:$0xff]  ;;  %v207_v19 = vld [vmem:[%s3079_s1 + $0x568] sm:$0xff]  ;;  %v222_v21 = vld [vmem:[%s3079_s1 + $0x5e0] sm:$0xff] }
  0x33   :  { %1746 = vmatpush3.msra.mxu1 %v139_v31  ;;  %1712 = vmatprep.subr.mxu0 %v122_v32  ;;  %v174_v22 = vld [vmem:[%s3079_s1 + $0x460] sm:$0xff]  ;;  %v189_v24 = vld [vmem:[%s3079_s1 + $0x4d8] sm:$0xff]  ;;  %v188_v28 = vld [vmem:[%s3079_s1 + $0x4d0] sm:$0xff] }
  0x34   :  { %1747 = vmatprep.subr.mxu1 %v154_v33  ;;  %1713 = vmatpush3.msra.mxu0 %v106_v34  ;;  %v206_v23 = vld [vmem:[%s3079_s1 + $0x560] sm:$0xff]  ;;  %v221_v25 = vld [vmem:[%s3079_s1 + $0x5d8] sm:$0xff]  ;;  %v220_v29 = vld [vmem:[%s3079_s1 + $0x5d0] sm:$0xff] }
  0x35   :  { %1748 = vmatpush3.msra.mxu1 %v138_v35  ;;  %1714 = vmatprep.subr.mxu0 %v121_v36  ;;  %v173_v26 = vld [vmem:[%s3079_s1 + $0x458] sm:$0xff]  ;;  %v172_v30 = vld [vmem:[%s3079_s1 + $0x450] sm:$0xff]  ;;  %v187_v32 = vld [vmem:[%s3079_s1 + $0x4c8] sm:$0xff] }
  0x36   :  { %1749 = vmatprep.subr.mxu1 %v153_v37  ;;  %1715 = vmatpush3.msra.mxu0 %v105_v38  ;;  %v205_v27 = vld [vmem:[%s3079_s1 + $0x558] sm:$0xff]  ;;  %v204_v31 = vld [vmem:[%s3079_s1 + $0x550] sm:$0xff]  ;;  %v219_v33 = vld [vmem:[%s3079_s1 + $0x5c8] sm:$0xff] }
  0x37   :  { %1750 = vmatpush3.msra.mxu1 %v137_v39  ;;  %1716 = vmatprep.subr.mxu0 %v120_v40  ;;  %v171_v34 = vld [vmem:[%s3079_s1 + $0x448] sm:$0xff]  ;;  %v186_v36 = vld [vmem:[%s3079_s1 + $0x4c0] sm:$0xff]  ;;  %v185_v40 = vld [vmem:[%s3079_s1 + $0x4b8] sm:$0xff] }
  0x38   :  { %1751 = vmatprep.subr.mxu1 %v152_v41  ;;  %1717 = vmatpush3.msra.mxu0 %v104_v42  ;;  %v203_v35 = vld [vmem:[%s3079_s1 + $0x548] sm:$0xff]  ;;  %v218_v37 = vld [vmem:[%s3079_s1 + $0x5c0] sm:$0xff]  ;;  %v217_v41 = vld [vmem:[%s3079_s1 + $0x5b8] sm:$0xff] }
  0x39   :  { %1752 = vmatpush3.msra.mxu1 %v136_v43  ;;  %1718 = vmatprep.subr.mxu0 %v119_v44  ;;  %v170_v38 = vld [vmem:[%s3079_s1 + $0x440] sm:$0xff]  ;;  %v169_v42 = vld [vmem:[%s3079_s1 + $0x438] sm:$0xff]  ;;  %v184_v44 = vld [vmem:[%s3079_s1 + $0x4b0] sm:$0xff] }
  0x3a   :  { %1753 = vmatprep.subr.mxu1 %v151_v45  ;;  %1719 = vmatpush3.msra.mxu0 %v103_v46  ;;  %v202_v39 = vld [vmem:[%s3079_s1 + $0x540] sm:$0xff]  ;;  %v201_v43 = vld [vmem:[%s3079_s1 + $0x538] sm:$0xff]  ;;  %v216_v45 = vld [vmem:[%s3079_s1 + $0x5b0] sm:$0xff] }
  0x3b   :  { %1754 = vmatpush3.msra.mxu1 %v135_v47  ;;  %1720 = vmatprep.subr.mxu0 %v118_v48  ;;  %v168_v46 = vld [vmem:[%s3079_s1 + $0x430] sm:$0xff]  ;;  %v183_v48 = vld [vmem:[%s3079_s1 + $0x4a8] sm:$0xff] }
  0x3c   :  { %1755 = vmatprep.subr.mxu1 %v150_v49  ;;  %1721 = vmatpush3.msra.mxu0 %v102_v50  ;;  %v200_v47 = vld [vmem:[%s3079_s1 + $0x530] sm:$0xff]  ;;  %v215_v49 = vld [vmem:[%s3079_s1 + $0x5a8] sm:$0xff] }
  0x3d   :  { %1756 = vmatpush3.msra.mxu1 %v134_v51  ;;  %1722 = vmatprep.subr.mxu0 %v117_v52  ;;  %v167_v50 = vld [vmem:[%s3079_s1 + $0x428] sm:$0xff]  ;;  %v182_v52 = vld [vmem:[%s3079_s1 + $0x4a0] sm:$0xff] }
  0x3e   :  { %1757 = vmatprep.subr.mxu1 %v149_v53  ;;  %1723 = vmatpush3.msra.mxu0 %v101_v54  ;;  %v199_v51 = vld [vmem:[%s3079_s1 + $0x528] sm:$0xff]  ;;  %v214_v53 = vld [vmem:[%s3079_s1 + $0x5a0] sm:$0xff] }
  0x3f   :  { %1758 = vmatpush3.msra.mxu1 %v133_v55  ;;  %1724 = vmatprep.subr.mxu0 %v116_v56  ;;  %v166_v54 = vld [vmem:[%s3079_s1 + $0x420] sm:$0xff]  ;;  %v181_v56 = vld [vmem:[%s3079_s1 + $0x498] sm:$0xff] }
  0x40   :  { %1759 = vmatprep.subr.mxu1 %v148_v57  ;;  %1725 = vmatpush3.msra.mxu0 %v100_v58  ;;  %v198_v55 = vld [vmem:[%s3079_s1 + $0x520] sm:$0xff]  ;;  %v213_v57 = vld [vmem:[%s3079_s1 + $0x598] sm:$0xff] }
  0x41   :  { %1760 = vmatpush3.msra.mxu1 %v132_v59  ;;  %1726 = vmatprep.subr.mxu0 %v115_v60 }
  0x42   :  { %1761 = vmatprep.subr.mxu1 %v147_v61  ;;  %1727 = vmatpush3.msra.mxu0 %v99_v62 }
  0x43   :  { %1762 = vmatpush3.msra.mxu1 %v131_v63  ;;  %1728 = vmatprep.subr.mxu0 %v114_v0 }
  0x44   :  { %1763 = vmatprep.subr.mxu1 %v146_v1  ;;  %1729 = vmatpush3.msra.mxu0 %v98_v2 }
  0x45   :  { %494 = vmatprep.mubr.f32.mxu0 %v2372_v3  ;;  %1764 = vmatpush3.msra.mxu1 %v130_v4 }
  0x46   :  { %495 = vmatmul.mubr.f32.vlgmr.msra.gmra.mxu0 %v2380_v5  ;;  %564 = vmatprep.mubr.f32.mxu1 %v2385_v6 }
  0x47   :  { %1768 = vmatprep.subr.mxu0 %v193_v7  ;;  %1803 = vmatprep.subr.mxu1 %v225_v8 }
  0x48   :  { %565 = vmatmul.mubr.f32.vlgmr.msra.gmra.mxu1 %v2397_v9  ;;  %1769 = vmatpush3.msra.mxu0 %v177_v10 }
  0x49   :  { %1804 = vmatpush3.msra.mxu1 %v209_v11  ;;  %1770 = vmatprep.subr.mxu0 %v192_v12 }
  0x4a   :  { %1805 = vmatprep.subr.mxu1 %v224_v13  ;;  %1771 = vmatpush3.msra.mxu0 %v176_v14 }
  0x4b   :  { %1806 = vmatpush3.msra.mxu1 %v208_v15  ;;  %1772 = vmatprep.subr.mxu0 %v191_v16 }
  0x4c   :  { %1807 = vmatprep.subr.mxu1 %v223_v17  ;;  %1773 = vmatpush3.msra.mxu0 %v175_v18 }
  0x4d   :  { %1808 = vmatpush3.msra.mxu1 %v207_v19  ;;  %1774 = vmatprep.subr.mxu0 %v190_v20 }
  0x4e   :  { %1809 = vmatprep.subr.mxu1 %v222_v21  ;;  %1775 = vmatpush3.msra.mxu0 %v174_v22 }
  0x4f   :  { %1810 = vmatpush3.msra.mxu1 %v206_v23  ;;  %1776 = vmatprep.subr.mxu0 %v189_v24 }
  0x50   :  { %1811 = vmatprep.subr.mxu1 %v221_v25  ;;  %1777 = vmatpush3.msra.mxu0 %v173_v26 }
  0x51   :  { %1812 = vmatpush3.msra.mxu1 %v205_v27  ;;  %1778 = vmatprep.subr.mxu0 %v188_v28 }
  0x52   :  { %1813 = vmatprep.subr.mxu1 %v220_v29  ;;  %1779 = vmatpush3.msra.mxu0 %v172_v30 }
  0x53   :  { %1814 = vmatpush3.msra.mxu1 %v204_v31  ;;  %1780 = vmatprep.subr.mxu0 %v187_v32 }
  0x54   :  { %1815 = vmatprep.subr.mxu1 %v219_v33  ;;  %1781 = vmatpush3.msra.mxu0 %v171_v34 }
  0x55   :  { %1816 = vmatpush3.msra.mxu1 %v203_v35  ;;  %1782 = vmatprep.subr.mxu0 %v186_v36 }
  0x56   :  { %1817 = vmatprep.subr.mxu1 %v218_v37  ;;  %1783 = vmatpush3.msra.mxu0 %v170_v38 }
  0x57   :  { %1818 = vmatpush3.msra.mxu1 %v202_v39  ;;  %1784 = vmatprep.subr.mxu0 %v185_v40 }
  0x58   :  { %1819 = vmatprep.subr.mxu1 %v217_v41  ;;  %1785 = vmatpush3.msra.mxu0 %v169_v42 }
  0x59   :  { %1820 = vmatpush3.msra.mxu1 %v201_v43  ;;  %1786 = vmatprep.subr.mxu0 %v184_v44 }
  0x5a   :  { %1821 = vmatprep.subr.mxu1 %v216_v45  ;;  %1787 = vmatpush3.msra.mxu0 %v168_v46 }
  0x5b   :  { %1822 = vmatpush3.msra.mxu1 %v200_v47  ;;  %1788 = vmatprep.subr.mxu0 %v183_v48 }
  0x5c   :  { %1823 = vmatprep.subr.mxu1 %v215_v49  ;;  %1789 = vmatpush3.msra.mxu0 %v167_v50 }
  0x5d   :  { %1824 = vmatpush3.msra.mxu1 %v199_v51 }
  0x5e   :  { %9 = vsyncpa [#allocation3], 0  ;;  %1790 = vmatprep.subr.mxu0 %v182_v52  ;;  %1825 = vmatprep.subr.mxu1 %v214_v53  ;;  %v165_v58 = vld [vmem:[%s3079_s1 + $0x418] sm:$0xff]  ;;  %v180_v60 = vld [vmem:[%s3079_s1 + $0x490] sm:$0xff]  ;;  %vm856_vm0 = vcmask 1041408   ;;  %vm1949_vm1 = vmmov 0  }
  0x5f   :  { %v197_v59 = vld [vmem:[%s3079_s1 + $0x518] sm:$0xff]  ;;  %1791 = vmatpush3.msra.mxu0 %v166_v54  ;;  %1826 = vmatpush3.msra.mxu1 %v198_v55  ;;  %v212_v61 = vld [vmem:[%s3079_s1 + $0x590] sm:$0xff]  ;;  %v179_v0 = vld [vmem:[%s3079_s1 + $0x488] sm:$0xff]  ;;  %vm852_vm2 = vcmask 15360   ;;  %vm1000_vm3 = vcmask 261120  }
  0x60   :  { %1792 = vmatprep.subr.mxu0 %v181_v56  ;;  %1827 = vmatprep.subr.mxu1 %v213_v57  ;;  %v164_v62 = vld [vmem:[%s3079_s1 + $0x410] sm:$0xff]  ;;  %v211_v1 = vld [vmem:[%s3079_s1 + $0x588] sm:$0xff]  ;;  %v178_v7 = vld [vmem:[%s3079_s1 + $0x480] sm:$0xff] }
  0x61   :  { %v196_v63 = vld [vmem:[%s3079_s1 + $0x510] sm:$0xff]  ;;  %1793 = vmatpush3.msra.mxu0 %v165_v58  ;;  %1828 = vmatpush3.msra.mxu1 %v197_v59  ;;  %v163_v2 = vld [vmem:[%s3079_s1 + $0x408] sm:$0xff]  ;;  %v210_v8 = vld [vmem:[%s3079_s1 + $0x580] sm:$0xff] }
  0x62   :  { %1794 = vmatprep.subr.mxu0 %v180_v60  ;;  %1829 = vmatprep.subr.mxu1 %v212_v61  ;;  %v195_v4 = vld [vmem:[%s3079_s1 + $0x508] sm:$0xff]  ;;  %v162_v10 = vld [vmem:[%s3079_s1 + $0x400] sm:$0xff]  ;;  %v2601_v14 = vld [vmem:[%s3078_s0 + $0x58] sm:$0xff] }
  0x63   :  { %1795 = vmatpush3.msra.mxu0 %v164_v62  ;;  %1830 = vmatpush3.msra.mxu1 %v196_v63  ;;  %v2588_v11 = vld [vmem:[%s3078_s0 + $0x48] sm:$0xff]  ;;  %v194_v12 = vld [vmem:[%s3079_s1 + $0x500] sm:$0xff]  ;;  %v257_v15 = vld [vmem:[%s3079_s1 + $0x6f8] sm:$0xff] }
  0x64   :  { %1796 = vmatprep.subr.mxu0 %v179_v0  ;;  %1831 = vmatprep.subr.mxu1 %v211_v1  ;;  %v2596_v13 = vld [vmem:[%s3078_s0 + $0x40] sm:$0xff]  ;;  %v289_v16 = vld [vmem:[%s3079_s1 + $0x7f8] sm:$0xff]  ;;  %v2613_v17 = vld [vmem:[%s3078_s0 + $0x50] sm:$0xff] }
  0x65   :  { %1797 = vmatpush3.msra.mxu0 %v163_v2  ;;  %1832 = vmatpush3.msra.mxu1 %v195_v4  ;;  %v241_v18 = vld [vmem:[%s3079_s1 + $0x678] sm:$0xff]  ;;  %v256_v20 = vld [vmem:[%s3079_s1 + $0x6f0] sm:$0xff]  ;;  %v255_v24 = vld [vmem:[%s3079_s1 + $0x6e8] sm:$0xff] }
  0x66   :  { %1798 = vmatprep.subr.mxu0 %v178_v7  ;;  %1833 = vmatprep.subr.mxu1 %v210_v8  ;;  %v273_v19 = vld [vmem:[%s3079_s1 + $0x778] sm:$0xff]  ;;  %v288_v21 = vld [vmem:[%s3079_s1 + $0x7f0] sm:$0xff]  ;;  %v287_v25 = vld [vmem:[%s3079_s1 + $0x7e8] sm:$0xff] }
  0x67   :  { %1799 = vmatpush3.msra.mxu0 %v162_v10  ;;  %634 = vmatprep.mubr.f32.mxu0 %v2588_v11  ;;  %v240_v22 = vld [vmem:[%s3079_s1 + $0x670] sm:$0xff]  ;;  %v239_v26 = vld [vmem:[%s3079_s1 + $0x668] sm:$0xff]  ;;  %v254_v28 = vld [vmem:[%s3079_s1 + $0x6e0] sm:$0xff] }
  0x68   :  { %1834 = vmatpush3.msra.mxu1 %v194_v12  ;;  %635 = vmatmul.mubr.f32.vlgmr.msra.gmra.mxu0 %v2596_v13  ;;  %v272_v23 = vld [vmem:[%s3079_s1 + $0x770] sm:$0xff]  ;;  %v271_v27 = vld [vmem:[%s3079_s1 + $0x768] sm:$0xff]  ;;  %v286_v29 = vld [vmem:[%s3079_s1 + $0x7e0] sm:$0xff] }
  0x69   :  { %704 = vmatprep.mubr.f32.mxu1 %v2601_v14  ;;  %1838 = vmatprep.subr.mxu0 %v257_v15  ;;  %v238_v30 = vld [vmem:[%s3079_s1 + $0x660] sm:$0xff]  ;;  %v253_v32 = vld [vmem:[%s3079_s1 + $0x6d8] sm:$0xff]  ;;  %v252_v36 = vld [vmem:[%s3079_s1 + $0x6d0] sm:$0xff] }
  0x6a   :  { %1873 = vmatprep.subr.mxu1 %v289_v16  ;;  %705 = vmatmul.mubr.f32.vlgmr.msra.gmra.mxu1 %v2613_v17  ;;  %v270_v31 = vld [vmem:[%s3079_s1 + $0x760] sm:$0xff]  ;;  %v285_v33 = vld [vmem:[%s3079_s1 + $0x7d8] sm:$0xff]  ;;  %v284_v37 = vld [vmem:[%s3079_s1 + $0x7d0] sm:$0xff] }
  0x6b   :  { %1839 = vmatpush3.msra.mxu0 %v241_v18  ;;  %1874 = vmatpush3.msra.mxu1 %v273_v19  ;;  %v237_v34 = vld [vmem:[%s3079_s1 + $0x658] sm:$0xff]  ;;  %v236_v38 = vld [vmem:[%s3079_s1 + $0x650] sm:$0xff]  ;;  %v251_v40 = vld [vmem:[%s3079_s1 + $0x6c8] sm:$0xff] }
  0x6c   :  { %1840 = vmatprep.subr.mxu0 %v256_v20  ;;  %1875 = vmatprep.subr.mxu1 %v288_v21  ;;  %v269_v35 = vld [vmem:[%s3079_s1 + $0x758] sm:$0xff]  ;;  %v268_v39 = vld [vmem:[%s3079_s1 + $0x750] sm:$0xff]  ;;  %v283_v41 = vld [vmem:[%s3079_s1 + $0x7c8] sm:$0xff] }
  0x6d   :  { %1841 = vmatpush3.msra.mxu0 %v240_v22  ;;  %1876 = vmatpush3.msra.mxu1 %v272_v23  ;;  %v235_v42 = vld [vmem:[%s3079_s1 + $0x648] sm:$0xff]  ;;  %v250_v44 = vld [vmem:[%s3079_s1 + $0x6c0] sm:$0xff]  ;;  %v249_v48 = vld [vmem:[%s3079_s1 + $0x6b8] sm:$0xff] }
  0x6e   :  { %1842 = vmatprep.subr.mxu0 %v255_v24  ;;  %1877 = vmatprep.subr.mxu1 %v287_v25  ;;  %v267_v43 = vld [vmem:[%s3079_s1 + $0x748] sm:$0xff]  ;;  %v282_v45 = vld [vmem:[%s3079_s1 + $0x7c0] sm:$0xff]  ;;  %v281_v49 = vld [vmem:[%s3079_s1 + $0x7b8] sm:$0xff] }
  0x6f   :  { %1843 = vmatpush3.msra.mxu0 %v239_v26  ;;  %1878 = vmatpush3.msra.mxu1 %v271_v27  ;;  %v234_v46 = vld [vmem:[%s3079_s1 + $0x640] sm:$0xff]  ;;  %v233_v50 = vld [vmem:[%s3079_s1 + $0x638] sm:$0xff]  ;;  %v248_v52 = vld [vmem:[%s3079_s1 + $0x6b0] sm:$0xff] }
  0x70   :  { %1844 = vmatprep.subr.mxu0 %v254_v28  ;;  %1879 = vmatprep.subr.mxu1 %v286_v29  ;;  %v266_v47 = vld [vmem:[%s3079_s1 + $0x740] sm:$0xff]  ;;  %v265_v51 = vld [vmem:[%s3079_s1 + $0x738] sm:$0xff]  ;;  %v280_v53 = vld [vmem:[%s3079_s1 + $0x7b0] sm:$0xff]  ;;  %v1948_v28 = vmov 0.0  }
  0x71   :  { %1845 = vmatpush3.msra.mxu0 %v238_v30  ;;  %1880 = vmatpush3.msra.mxu1 %v270_v31  ;;  %v232_v54 = vld [vmem:[%s3079_s1 + $0x630] sm:$0xff]  ;;  %v247_v56 = vld [vmem:[%s3079_s1 + $0x6a8] sm:$0xff]  ;;  %v246_v60 = vld [vmem:[%s3079_s1 + $0x6a0] sm:$0xff] }
  0x72   :  { %1846 = vmatprep.subr.mxu0 %v253_v32  ;;  %1881 = vmatprep.subr.mxu1 %v285_v33  ;;  %v264_v55 = vld [vmem:[%s3079_s1 + $0x730] sm:$0xff]  ;;  %v279_v57 = vld [vmem:[%s3079_s1 + $0x7a8] sm:$0xff]  ;;  %v278_v61 = vld [vmem:[%s3079_s1 + $0x7a0] sm:$0xff] }
  0x73   :  { %1847 = vmatpush3.msra.mxu0 %v237_v34  ;;  %1882 = vmatpush3.msra.mxu1 %v269_v35  ;;  %v231_v58 = vld [vmem:[%s3079_s1 + $0x628] sm:$0xff]  ;;  %v230_v62 = vld [vmem:[%s3079_s1 + $0x620] sm:$0xff]  ;;  %v245_v0 = vld [vmem:[%s3079_s1 + $0x698] sm:$0xff] }
  0x74   :  { %1848 = vmatprep.subr.mxu0 %v252_v36  ;;  %1883 = vmatprep.subr.mxu1 %v284_v37  ;;  %v263_v59 = vld [vmem:[%s3079_s1 + $0x728] sm:$0xff]  ;;  %v262_v63 = vld [vmem:[%s3079_s1 + $0x720] sm:$0xff]  ;;  %v277_v1 = vld [vmem:[%s3079_s1 + $0x798] sm:$0xff] }
  0x75   :  { %1849 = vmatpush3.msra.mxu0 %v236_v38  ;;  %1884 = vmatpush3.msra.mxu1 %v268_v39  ;;  %v229_v2 = vld [vmem:[%s3079_s1 + $0x618] sm:$0xff]  ;;  %v244_v7 = vld [vmem:[%s3079_s1 + $0x690] sm:$0xff]  ;;  %v243_v15 = vld [vmem:[%s3079_s1 + $0x688] sm:$0xff] }
  0x76   :  { %1850 = vmatprep.subr.mxu0 %v251_v40  ;;  %1885 = vmatprep.subr.mxu1 %v283_v41  ;;  %v261_v4 = vld [vmem:[%s3079_s1 + $0x718] sm:$0xff]  ;;  %v276_v8 = vld [vmem:[%s3079_s1 + $0x790] sm:$0xff]  ;;  %v275_v16 = vld [vmem:[%s3079_s1 + $0x788] sm:$0xff] }
  0x77   :  { %1851 = vmatpush3.msra.mxu0 %v235_v42  ;;  %1886 = vmatpush3.msra.mxu1 %v267_v43  ;;  %v228_v10 = vld [vmem:[%s3079_s1 + $0x610] sm:$0xff]  ;;  %v227_v18 = vld [vmem:[%s3079_s1 + $0x608] sm:$0xff]  ;;  %v242_v20 = vld [vmem:[%s3079_s1 + $0x680] sm:$0xff] }
  0x78   :  { %1852 = vmatprep.subr.mxu0 %v250_v44  ;;  %1887 = vmatprep.subr.mxu1 %v282_v45  ;;  %v260_v12 = vld [vmem:[%s3079_s1 + $0x710] sm:$0xff]  ;;  %v259_v19 = vld [vmem:[%s3079_s1 + $0x708] sm:$0xff]  ;;  %v274_v21 = vld [vmem:[%s3079_s1 + $0x780] sm:$0xff] }
  0x79   :  { %1853 = vmatpush3.msra.mxu0 %v234_v46  ;;  %1888 = vmatpush3.msra.mxu1 %v266_v47  ;;  %v226_v22 = vld [vmem:[%s3079_s1 + $0x600] sm:$0xff]  ;;  %v2804_v23 = vld [vmem:[%s3078_s0 + $0x68] sm:$0xff]  ;;  %v2812_v25 = vld [vmem:[%s3078_s0 + $0x78] sm:$0xff] }
  0x7a   :  { %1854 = vmatprep.subr.mxu0 %v249_v48  ;;  %1889 = vmatprep.subr.mxu1 %v281_v49  ;;  %v258_v24 = vld [vmem:[%s3079_s1 + $0x700] sm:$0xff]  ;;  %v2822_v27 = vld [vmem:[%s3078_s0 + $0x70] sm:$0xff] }
  0x7b   :  { %1855 = vmatpush3.msra.mxu0 %v233_v50  ;;  %1890 = vmatpush3.msra.mxu1 %v265_v51  ;;  %v2817_v26 = vld [vmem:[%s3078_s0 + $0x60] sm:$0xff] }
  0x7c   :  { %1856 = vmatprep.subr.mxu0 %v248_v52  ;;  %1891 = vmatprep.subr.mxu1 %v280_v53  ;;  %v851_v29 = vld [vmem:[%s3080_s2] sm:$0x3] }
  0x7d   :  { %1857 = vmatpush3.msra.mxu0 %v232_v54  ;;  %1892 = vmatpush3.msra.mxu1 %v264_v55 }
  0x7e   :  { %1858 = vmatprep.subr.mxu0 %v247_v56  ;;  %1893 = vmatprep.subr.mxu1 %v279_v57 }
  0x7f   :  { %1859 = vmatpush3.msra.mxu0 %v231_v58  ;;  %1894 = vmatpush3.msra.mxu1 %v263_v59 }
  0x80   :  { %1860 = vmatprep.subr.mxu0 %v246_v60  ;;  %1895 = vmatprep.subr.mxu1 %v278_v61 }
  0x81   :  { %1861 = vmatpush3.msra.mxu0 %v230_v62  ;;  %1896 = vmatpush3.msra.mxu1 %v262_v63  ;;  %v985_v62 = vld [vmem:[%s3081_s3 + $0x188] sm:$0xff]  ;;  %v987_v63 = vld [vmem:[%s3081_s3 + $0x198] sm:$0xff] }
  0x82   :  { %1862 = vmatprep.subr.mxu0 %v245_v0  ;;  %1897 = vmatprep.subr.mxu1 %v277_v1  ;;  %v984_v0 = vld [vmem:[%s3081_s3 + $0x180] sm:$0xff]  ;;  %v986_v1 = vld [vmem:[%s3081_s3 + $0x190] sm:$0xff] }
  0x83   :  { %1863 = vmatpush3.msra.mxu0 %v229_v2  ;;  %1898 = vmatpush3.msra.mxu1 %v261_v4  ;;  %v969_v2 = vld [vmem:[%s3081_s3 + $0x108] sm:$0xff]  ;;  %v971_v4 = vld [vmem:[%s3081_s3 + $0x118] sm:$0xff] }
  0x84   :  { %1864 = vmatprep.subr.mxu0 %v244_v7  ;;  %1899 = vmatprep.subr.mxu1 %v276_v8  ;;  %v968_v7 = vld [vmem:[%s3081_s3 + $0x100] sm:$0xff]  ;;  %v970_v8 = vld [vmem:[%s3081_s3 + $0x110] sm:$0xff] }
  0x85   :  { %1865 = vmatpush3.msra.mxu0 %v228_v10  ;;  %1900 = vmatpush3.msra.mxu1 %v260_v12  ;;  %v953_v10 = vld [vmem:[%s3081_s3 + $0x88] sm:$0xff]  ;;  %v955_v12 = vld [vmem:[%s3081_s3 + $0x98] sm:$0xff] }
  0x86   :  { %1866 = vmatprep.subr.mxu0 %v243_v15  ;;  %1901 = vmatprep.subr.mxu1 %v275_v16  ;;  %v952_v15 = vld [vmem:[%s3081_s3 + $0x80] sm:$0xff]  ;;  %v954_v16 = vld [vmem:[%s3081_s3 + $0x90] sm:$0xff] }
  0x87   :  { %1867 = vmatpush3.msra.mxu0 %v227_v18  ;;  %1902 = vmatpush3.msra.mxu1 %v259_v19  ;;  %v937_v18 = vld [vmem:[%s3081_s3 + $0x8] sm:$0xff]  ;;  %v939_v19 = vld [vmem:[%s3081_s3 + $0x18] sm:$0xff] }
  0x88   :  { %1868 = vmatprep.subr.mxu0 %v242_v20  ;;  %1903 = vmatprep.subr.mxu1 %v274_v21  ;;  %v936_v20 = vld [vmem:[%s3081_s3] sm:$0xff]  ;;  %v938_v21 = vld [vmem:[%s3081_s3 + $0x10] sm:$0xff] }
  0x89   :  { %1869 = vmatpush3.msra.mxu0 %v226_v22  ;;  %774 = vmatprep.mubr.f32.mxu0 %v2804_v23  ;;  %v989_v22 = vld [vmem:[%s3081_s3 + $0x1a8] sm:$0xff] }
  0x8a   :  { %1904 = vmatpush3.msra.mxu1 %v258_v24  ;;  %844 = vmatprep.mubr.f32.mxu1 %v2812_v25  ;;  %v991_v24 = vld [vmem:[%s3081_s3 + $0x1b8] sm:$0xff] }
  0x8b   :  { %775 = vmatmul.mubr.f32.vlgmr.msra.gmra.mxu0 %v2817_v26  ;;  %845 = vmatmul.mubr.f32.vlgmr.msra.gmra.mxu1 %v2822_v27 }
  0x8c   :  { %1910 = vmatprep.subr.mxu0 %v1948_v28  ;;  %1068 = vmatprep.mubr.f32.mxu1 %v1948_v28 }
  0x8d   :  { %1911 = vmatpush3.msk.msra.mxu0 %vm856_vm0, %v851_v29  ;;  %1912 = vmatprep.mubr.msk.f32.mxu0 %vm1949_vm1, %v1948_v28 }
  0x8e   :  { %1028 = vmatprep.subr.mxu1 %v985_v62  ;;  %1099 = vmatprep.subr.mxu0 %v987_v63  ;;  %v945_v62 = vld [vmem:[%s3081_s3 + $0x48] sm:$0xff]  ;;  %v947_v63 = vld [vmem:[%s3081_s3 + $0x58] sm:$0xff] }
  0x8f   :  { %1029 = vmatpush1.msra.mxu1 %v984_v0  ;;  %v944_v0 = vld [vmem:[%s3081_s3 + $0x40] sm:$0xff] }
  0x90   :  { %1030 = vmatprep.subr.mxu1 %v969_v2  ;;  %v997_v2 = vld [vmem:[%s3081_s3 + $0x1e8] sm:$0xff] }
  0x91   :  { %1031 = vmatpush1.msra.mxu1 %v968_v7  ;;  %v996_v7 = vld [vmem:[%s3081_s3 + $0x1e0] sm:$0xff] }
  0x92   :  { %1032 = vmatprep.subr.mxu1 %v953_v10  ;;  %v981_v10 = vld [vmem:[%s3081_s3 + $0x168] sm:$0xff] }
  0x93   :  { %1033 = vmatpush1.msra.mxu1 %v952_v15  ;;  %v980_v15 = vld [vmem:[%s3081_s3 + $0x160] sm:$0xff] }
  0x94   :  { %1034 = vmatprep.subr.mxu1 %v937_v18  ;;  %v965_v18 = vld [vmem:[%s3081_s3 + $0xe8] sm:$0xff] }
  0x95   :  { %1035 = vmatpush1.msra.mxu1 %v936_v20  ;;  %v964_v20 = vld [vmem:[%s3081_s3 + $0xe0] sm:$0xff] }
  0x96   :  { %1170 = vmatprep.subr.mxu1 %v989_v22  ;;  %v949_v22 = vld [vmem:[%s3081_s3 + $0x68] sm:$0xff] }
  0xe4   :  { %v1660_v30 = vpop.f32.mrf.mxu0 }
  0xe5   :  { %v1695_v31 = vpop.f32.mrf.mxu1 }
  0xe6   :  { %v1661_v32 = vpop.f32.mrf.mxu0 }
  0xe7   :  { %v1696_v34 = vpop.f32.mrf.mxu1  ;;  %v1662_v37 = vadd.f32 %v1661_v32, %v1660_v30 }
  0xe8   :  { %v1697_v38 = vadd.f32 %v1696_v34, %v1695_v31 }
  0xea   :  { %v427_v42 = vadd.f32 %v1697_v38, %v1662_v37  ;;  %v973_v38 = vld [vmem:[%s3081_s3 + $0x128] sm:$0xff] }
 0x106   :  { %v1730_v33 = vpop.f32.mrf.mxu0 }
 0x108   :  { %v1765_v35 = vpop.f32.mrf.mxu1  ;;  %v1731_v36 = vpop.f32.mrf.mxu0 }
 0x109   :  { %v1732_v40 = vadd.f32 %v1731_v36, %v1730_v33  ;;  %v990_v36 = vld [vmem:[%s3081_s3 + $0x1b0] sm:$0xff] }
 0x10a   :  { %v1766_v41 = vpop.f32.mrf.mxu1 }
 0x10b   :  { %v497_v45 = vadd.f32 %v1732_v40, %v427_v42  ;;  %v1767_v46 = vadd.f32 %v1766_v41, %v1765_v35  ;;  %v988_v35 = vld [vmem:[%s3081_s3 + $0x1a0] sm:$0xff]  ;;  %v974_v41 = vld [vmem:[%s3081_s3 + $0x130] sm:$0xff]  ;;  %v957_v42 = vld [vmem:[%s3081_s3 + $0xa8] sm:$0xff] }
 0x10c   :  { %v972_v40 = vld [vmem:[%s3081_s3 + $0x120] sm:$0xff] }
 0x10d   :  { %v567_v49 = vadd.f32 %v1767_v46, %v497_v45  ;;  %v958_v45 = vld [vmem:[%s3081_s3 + $0xb0] sm:$0xff]  ;;  %v941_v46 = vld [vmem:[%s3081_s3 + $0x28] sm:$0xff] }
 0x128   :  { %v1800_v39 = vpop.f32.mrf.mxu0 }
 0x12a   :  { %v1835_v43 = vpop.f32.mrf.mxu1  ;;  %v1801_v44 = vpop.f32.mrf.mxu0 }
 0x12b   :  { %v1802_v47 = vadd.f32 %v1801_v44, %v1800_v39  ;;  %v975_v39 = vld [vmem:[%s3081_s3 + $0x138] sm:$0xff]  ;;  %v956_v44 = vld [vmem:[%s3081_s3 + $0xa0] sm:$0xff] }
 0x12c   :  { %v1836_v48 = vpop.f32.mrf.mxu1 }
 0x12d   :  { %v637_v50 = vadd.f32 %v1802_v47, %v567_v49  ;;  %v1837_v51 = vadd.f32 %v1836_v48, %v1835_v43  ;;  %v959_v43 = vld [vmem:[%s3081_s3 + $0xb8] sm:$0xff]  ;;  %v940_v48 = vld [vmem:[%s3081_s3 + $0x20] sm:$0xff]  ;;  %v942_v49 = vld [vmem:[%s3081_s3 + $0x30] sm:$0xff] }
 0x12e   :  { %v943_v47 = vld [vmem:[%s3081_s3 + $0x38] sm:$0xff] }
 0x12f   :  { %v707_v56 = vadd.f32 %v1837_v51, %v637_v50  ;;  %v993_v50 = vld [vmem:[%s3081_s3 + $0x1c8] sm:$0xff]  ;;  %v995_v51 = vld [vmem:[%s3081_s3 + $0x1d8] sm:$0xff] }
 0x14b   :  { %v1870_v52 = vpop.f32.mrf.mxu0  ;;  %v1905_v53 = vpop.f32.mrf.mxu1 }
 0x14d   :  { %v1871_v54 = vpop.f32.mrf.mxu0  ;;  %v1906_v55 = vpop.f32.mrf.mxu1 }
 0x14e   :  { %v1872_v57 = vadd.f32 %v1871_v54, %v1870_v52  ;;  %v1907_v59 = vadd.f32 %v1906_v55, %v1905_v53  ;;  %v992_v52 = vld [vmem:[%s3081_s3 + $0x1c0] sm:$0xff]  ;;  %v994_v53 = vld [vmem:[%s3081_s3 + $0x1d0] sm:$0xff]  ;;  %v977_v54 = vld [vmem:[%s3081_s3 + $0x148] sm:$0xff] }
 0x14f   :  { %v979_v55 = vld [vmem:[%s3081_s3 + $0x158] sm:$0xff] }
 0x150   :  { %v777_v58 = vadd.f32 %v1872_v57, %v707_v56  ;;  %v976_v56 = vld [vmem:[%s3081_s3 + $0x140] sm:$0xff]  ;;  %v978_v57 = vld [vmem:[%s3081_s3 + $0x150] sm:$0xff] }
 0x152   :  { %v847_v60 = vadd.f32 %v1907_v59, %v777_v58  ;;  %v961_v58 = vld [vmem:[%s3081_s3 + $0xc8] sm:$0xff]  ;;  %v963_v59 = vld [vmem:[%s3081_s3 + $0xd8] sm:$0xff] }
 0x154   :  { %v850_v61 = vmax.f32 %v847_v60, 0.0  ;;  %v960_v60 = vld [vmem:[%s3081_s3 + $0xc0] sm:$0xff] }
 0x156   :  { %1913 = vmatmul.mubr.msk.f32.vlgmr.msra.gmra.mxu0 %vm852_vm2, %v850_v61  ;;  %v962_v61 = vld [vmem:[%s3081_s3 + $0xd0] sm:$0xff] }
 0x157   :  { %1139 = vmatprep.mubr.f32.mxu0 %v1948_v28  ;;  %1100 = vmatpush1.msra.mxu0 %v986_v1  ;;  %v946_v1 = vld [vmem:[%s3081_s3 + $0x50] sm:$0xff] }
 0x158   :  { %1101 = vmatprep.subr.mxu0 %v971_v4  ;;  %v999_v4 = vld [vmem:[%s3081_s3 + $0x1f8] sm:$0xff] }
 0x159   :  { %1102 = vmatpush1.msra.mxu0 %v970_v8  ;;  %v998_v8 = vld [vmem:[%s3081_s3 + $0x1f0] sm:$0xff] }
 0x15a   :  { %1103 = vmatprep.subr.mxu0 %v955_v12  ;;  %v983_v12 = vld [vmem:[%s3081_s3 + $0x178] sm:$0xff] }
 0x15b   :  { %1104 = vmatpush1.msra.mxu0 %v954_v16  ;;  %v982_v16 = vld [vmem:[%s3081_s3 + $0x170] sm:$0xff] }
 0x15c   :  { %1105 = vmatprep.subr.mxu0 %v939_v19  ;;  %v967_v19 = vld [vmem:[%s3081_s3 + $0xf8] sm:$0xff] }
 0x15d   :  { %1106 = vmatpush1.msra.mxu0 %v938_v21  ;;  %v966_v21 = vld [vmem:[%s3081_s3 + $0xf0] sm:$0xff] }
 0x15e   :  { %1241 = vmatprep.subr.mxu0 %v991_v24  ;;  %v951_v24 = vld [vmem:[%s3081_s3 + $0x78] sm:$0xff] }
 0x216   :  { %v926_v29 = vpop.f32.mrf.mxu0 }
 0x217   :  { %v930_v30 = vsub.f32 0.0, %v926_v29  ;;  %v948_v29 = vld [vmem:[%s3081_s3 + $0x60] sm:$0xff] }
 0x218   :  { %v1914_v31 = vpop.f32.mrf.mxu0 }
 0x219   :  { %v931_v32 = vmul.f32 1.442695, %v930_v30  ;;  %v950_v30 = vld [vmem:[%s3081_s3 + $0x70] sm:$0xff] }
 0x21b   :  { %1918 = vpow2.f32 %v931_v32 }
 0x228   :  { %v1919_v33 = vpop.eup %1918 }
 0x229   :  { %v933_v34 = vadd.f32 1.0, %v1919_v33  ;;  %v1922_v33 = vld [vmem:[%s3078_s0] sm:$0xff] }
 0x22b   :  { %1920 = vrcp.f32 %v933_v34 }
 0x238   :  { %v2895_v37 = vpop.eup %1920 }
 0x239   :  { %1620 = vmatmul.mubr.msk.f32.vlgmr.msra.gmra.mxu1 %vm1000_vm3, %v2895_v37  ;;  %1621 = vmatmul.mubr.msk.f32.vlgmr.msra.gmra.mxu0 %vm1000_vm3, %v2895_v37 }
 0x23a   :  { %1171 = vmatpush1.msra.mxu1 %v988_v35  ;;  %1242 = vmatpush1.msra.mxu0 %v990_v36  ;;  %v1923_v35 = vld [vmem:[%s3078_s0 + $0x10] sm:$0xff] }
 0x23b   :  { %1172 = vmatprep.subr.mxu1 %v973_v38  ;;  %1243 = vmatprep.subr.mxu0 %v975_v39 }
 0x23c   :  { %1173 = vmatpush1.msra.mxu1 %v972_v40  ;;  %1244 = vmatpush1.msra.mxu0 %v974_v41  ;;  %v1925_v40 = vld [vmem:[%s3078_s0 + $0x18] sm:$0xff] }
 0x23d   :  { %1174 = vmatprep.subr.mxu1 %v957_v42  ;;  %1245 = vmatprep.subr.mxu0 %v959_v43 }
 0x23e   :  { %1175 = vmatpush1.msra.mxu1 %v956_v44  ;;  %1246 = vmatpush1.msra.mxu0 %v958_v45 }
 0x23f   :  { %1176 = vmatprep.subr.mxu1 %v941_v46  ;;  %1247 = vmatprep.subr.mxu0 %v943_v47 }
 0x240   :  { %1177 = vmatpush1.msra.mxu1 %v940_v48  ;;  %1210 = vmatprep.mubr.f32.mxu1 %v1948_v28 }
 0x241   :  { %1248 = vmatpush1.msra.mxu0 %v942_v49  ;;  %1281 = vmatprep.mubr.f32.mxu0 %v1948_v28 }
 0x242   :  { %1622 = vmatmul.mubr.msk.f32.vlgmr.msra.gmra.mxu1 %vm1000_vm3, %v2895_v37  ;;  %1623 = vmatmul.mubr.msk.f32.vlgmr.msra.gmra.mxu0 %vm1000_vm3, %v2895_v37 }
 0x243   :  { %1312 = vmatprep.subr.mxu1 %v993_v50  ;;  %1383 = vmatprep.subr.mxu0 %v995_v51 }
 0x244   :  { %1313 = vmatpush1.msra.mxu1 %v992_v52  ;;  %1384 = vmatpush1.msra.mxu0 %v994_v53 }
 0x245   :  { %1314 = vmatprep.subr.mxu1 %v977_v54  ;;  %1385 = vmatprep.subr.mxu0 %v979_v55 }
 0x246   :  { %1315 = vmatpush1.msra.mxu1 %v976_v56  ;;  %1386 = vmatpush1.msra.mxu0 %v978_v57 }
 0x247   :  { %1316 = vmatprep.subr.mxu1 %v961_v58  ;;  %1387 = vmatprep.subr.mxu0 %v963_v59 }
 0x248   :  { %1317 = vmatpush1.msra.mxu1 %v960_v60  ;;  %1388 = vmatpush1.msra.mxu0 %v962_v61 }
 0x249   :  { %1318 = vmatprep.subr.mxu1 %v945_v62  ;;  %1389 = vmatprep.subr.mxu0 %v947_v63 }
 0x24a   :  { %1319 = vmatpush1.msra.mxu1 %v944_v0  ;;  %1352 = vmatprep.mubr.f32.mxu1 %v1948_v28 }
 0x24b   :  { %1390 = vmatpush1.msra.mxu0 %v946_v1  ;;  %1423 = vmatprep.mubr.f32.mxu0 %v1948_v28 }
 0x24c   :  { %1624 = vmatmul.mubr.msk.f32.vlgmr.msra.gmra.mxu1 %vm1000_vm3, %v2895_v37  ;;  %1625 = vmatmul.mubr.msk.f32.vlgmr.msra.gmra.mxu0 %vm1000_vm3, %v2895_v37 }
 0x24d   :  { %1454 = vmatprep.subr.mxu1 %v997_v2  ;;  %1525 = vmatprep.subr.mxu0 %v999_v4 }
 0x24e   :  { %1455 = vmatpush1.msra.mxu1 %v996_v7  ;;  %1526 = vmatpush1.msra.mxu0 %v998_v8 }
 0x24f   :  { %1456 = vmatprep.subr.mxu1 %v981_v10  ;;  %1527 = vmatprep.subr.mxu0 %v983_v12 }
 0x250   :  { %1457 = vmatpush1.msra.mxu1 %v980_v15  ;;  %1528 = vmatpush1.msra.mxu0 %v982_v16 }
 0x251   :  { %1458 = vmatprep.subr.mxu1 %v965_v18  ;;  %1529 = vmatprep.subr.mxu0 %v967_v19 }
 0x252   :  { %1459 = vmatpush1.msra.mxu1 %v964_v20  ;;  %1530 = vmatpush1.msra.mxu0 %v966_v21 }
 0x253   :  { %1460 = vmatprep.subr.mxu1 %v949_v22  ;;  %1531 = vmatprep.subr.mxu0 %v951_v24 }
 0x254   :  { %1461 = vmatpush1.msra.mxu1 %v948_v29  ;;  %1494 = vmatprep.mubr.f32.mxu1 %v1948_v28 }
 0x255   :  { %1532 = vmatpush1.msra.mxu0 %v950_v30  ;;  %1565 = vmatprep.mubr.f32.mxu0 %v1948_v28 }
 0x256   :  { %1626 = vmatmul.mubr.msk.f32.vlgmr.msra.gmra.mxu1 %vm1000_vm3, %v2895_v37  ;;  %1627 = vmatmul.mubr.msk.f32.vlgmr.msra.gmra.mxu0 %vm1000_vm3, %v2895_v37  ;;  %v1924_v37 = vld [vmem:[%s3078_s0 + $0x8] sm:$0xff]  ;;  %s1950_s0 = smov [#allocation2]  }
 0x257   :  { %s1610_s10 = sshll.u32 %s1950_s0, 4  ;;  %s1611_s10 = int_to_ptr.vmem [resolvable:$true] %s1610_s10 }
 0x258   :  { %s1926_s11 = scalar_lea.vmem %s1611_s10, 2048  ;;  %p1931_p1 = scmp.lt.s32.totalorder %s1611_s10, %s1611_s10 }
 0x259   :  { %p1927_p0 = scmp.ne.s32.totalorder %s1611_s10, %s1926_s11  ;;  %p1932_p2 = scmp.lt.s32.totalorder %s1926_s11, %s1926_s11 }
 0x25b   :  { %p1933_p3 = por %p1932_p2, %p1931_p1 }
 0x25d   :  { %p1934_p4 = pnand %p1933_p3, %p1927_p0 }
 0x2f9   :  { %v1070_v31 = vpop.f32.mrf.mxu1  ;;  %v1141_v32 = vpop.f32.mrf.mxu0 }
 0x2fa   :  { %v1572_v34 = vmul.f32 %v1922_v33, %v1070_v31  ;;  %v1574_v36 = vmul.f32 %v1923_v35, %v1141_v32 }
 0x2fb   :  { %v1072_v38 = vpop.f32.mrf.mxu1  ;;  %v1143_v28 = vpop.f32.mrf.mxu0 }
 0x2fc   :  { %1588 = vst [vmem:[#allocation2] sm:$0xff] %v1572_v34  ;;  %1590 = vst [vmem:[#allocation2 + $0x10] sm:$0xff] %v1574_v36  ;;  %v1573_v39 = vmul.f32 %v1924_v37, %v1072_v38  ;;  %v1575_v41 = vmul.f32 %v1925_v40, %v1143_v28 }
 0x2fe   :  { %1589 = vst [vmem:[#allocation2 + $0x8] sm:$0xff] %v1573_v39  ;;  %1591 = vst [vmem:[#allocation2 + $0x18] sm:$0xff] %v1575_v41 }
 0x302   :  { %v1212_v42 = vpop.f32.mrf.mxu1  ;;  %v1283_v43 = vpop.f32.mrf.mxu0 }
 0x303   :  { %v1576_v44 = vmul.f32 %v1212_v42, %v2380_v5  ;;  %v1578_v45 = vmul.f32 %v1283_v43, %v2397_v9 }
 0x304   :  { %v1214_v46 = vpop.f32.mrf.mxu1  ;;  %v1285_v47 = vpop.f32.mrf.mxu0 }
 0x305   :  { %1592 = vst [vmem:[#allocation2 + $0x20] sm:$0xff] %v1576_v44  ;;  %1594 = vst [vmem:[#allocation2 + $0x30] sm:$0xff] %v1578_v45  ;;  %v1577_v48 = vmul.f32 %v1214_v46, %v2372_v3  ;;  %v1579_v49 = vmul.f32 %v1285_v47, %v2385_v6 }
 0x307   :  { %1593 = vst [vmem:[#allocation2 + $0x28] sm:$0xff] %v1577_v48  ;;  %1595 = vst [vmem:[#allocation2 + $0x38] sm:$0xff] %v1579_v49 }
 0x30c   :  { %v1354_v50 = vpop.f32.mrf.mxu1  ;;  %v1425_v51 = vpop.f32.mrf.mxu0 }
 0x30d   :  { %v1580_v52 = vmul.f32 %v1354_v50, %v2596_v13  ;;  %v1582_v53 = vmul.f32 %v1425_v51, %v2613_v17 }
 0x30e   :  { %v1356_v54 = vpop.f32.mrf.mxu1  ;;  %v1427_v5 = vpop.f32.mrf.mxu0 }
 0x30f   :  { %1596 = vst [vmem:[#allocation2 + $0x40] sm:$0xff] %v1580_v52  ;;  %1598 = vst [vmem:[#allocation2 + $0x50] sm:$0xff] %v1582_v53  ;;  %v1581_v9 = vmul.f32 %v1356_v54, %v2588_v11  ;;  %v1583_v55 = vmul.f32 %v1427_v5, %v2601_v14 }
 0x311   :  { %1597 = vst [vmem:[#allocation2 + $0x48] sm:$0xff] %v1581_v9  ;;  %1599 = vst [vmem:[#allocation2 + $0x58] sm:$0xff] %v1583_v55 }
 0x316   :  { %v1496_v3 = vpop.f32.mrf.mxu1  ;;  %v1567_v6 = vpop.f32.mrf.mxu0 }
 0x317   :  { %v1584_v56 = vmul.f32 %v1496_v3, %v2817_v26  ;;  %v1586_v13 = vmul.f32 %v1567_v6, %v2822_v27 }
 0x318   :  { %v1498_v57 = vpop.f32.mrf.mxu1  ;;  %v1569_v17 = vpop.f32.mrf.mxu0 }
 0x319   :  { %1600 = vst [vmem:[#allocation2 + $0x60] sm:$0xff] %v1584_v56  ;;  %1602 = vst [vmem:[#allocation2 + $0x70] sm:$0xff] %v1586_v13  ;;  %v1585_v58 = vmul.f32 %v1498_v57, %v2804_v23  ;;  %v1587_v11 = vmul.f32 %v1569_v17, %v2812_v25 }
 0x31b   :  { %1601 = vst [vmem:[#allocation2 + $0x68] sm:$0xff] %v1585_v58  ;;  %1603 = vst [vmem:[#allocation2 + $0x78] sm:$0xff] %v1587_v11 }
 0x31c   :  { %1937 = shalt.err (!%p1934_p4)
}
 0x31d   :  { %1613 = dma.vmem_to_hbm [thread:$0]  %s1611_s10, 2048, %s3082_s4, [#allocation3]  }
 0x31e   :  { %1946 = dma.done.wait [#allocation3], 2048  }
 0x31f   :  { %1947 = vsyncadd [#allocation3], 4294965248 }
 0x320   :  { %1617 = vsyncpa [#allocation3], 1 }

</bundles_post_ra>
